<compile_context>
chip_gen: v6e
topology: v6e:2x2x1
jax: 0.10.0
libtpu: 0.0.40
codegen_flags: <defaults>
</compile_context>

<pallas_src>
import math
from functools import partial

import jax
import jax.numpy as jnp
from jax.experimental import pallas as pl
from jax.experimental.pallas import tpu as pltpu


# ------------------------------- kernel body -------------------------------- #

def _embedder_kernel(*refs, cont_cols, cat_cols, cat_offsets, table_rows):
    """Fused Embedder forward for one row tile.

    refs (continuous features present):
      x (tile, F) f32, wc (n_cont, D) f32, bc (1, D) f32, table (T, D) f32,
      wo_c (D, D) f32, wo_e (D, D) f32, bo (1, D) f32  ->  out (tile, D) f32
    refs (no continuous features):
      x, table, wo_e, bo -> out
    """
    n_cont = len(cont_cols)
    if n_cont > 0:
        (x_ref, wc_ref, bc_ref, tab_ref,
         wo_c_ref, wo_e_ref, bo_ref, out_ref) = refs
    else:
        (x_ref, tab_ref, wo_e_ref, bo_ref, out_ref) = refs

    x = x_ref[...]                                        # (tile, F) f32
    tile = x.shape[0]

    # --- categorical: multi-hot over the concatenated table, one bool mask ----
    # Feature j with value v hits row off_j + 1 + v of its own segment; v == -1
    # hits that segment's zeroed padding row (padding_idx=0), as in PyTorch.
    # Segments are disjoint, so compares OR together; cast to f32 exactly once.
    row_ids = jax.lax.broadcasted_iota(jnp.int32, (tile, table_rows), 1)
    hit = None
    for col, off in zip(cat_cols, cat_offsets):           # static unrolled loop
        tgt = x[:, col:col + 1].astype(jnp.int32) + (1 + off)   # (tile, 1)
        h = row_ids == tgt
        hit = h if hit is None else jnp.logical_or(hit, h)
    multihot = hit.astype(jnp.float32)

    # One MXU matmul does every lookup + the sum over categorical features.
    cat_emb = jnp.dot(multihot, tab_ref[...],
                      preferred_element_type=jnp.float32)       # (tile, D)

    if n_cont > 0:
        # Tiny-K (n_cont) projection: broadcast FMAs on the VPU, not the MXU.
        cont_emb = bc_ref[...]                                   # (1, D) -> bcast
        for j, col in enumerate(cont_cols):                      # static unrolled
            cont_emb = cont_emb + x[:, col:col + 1] * wc_ref[j:j + 1, :]
        # output Linear on concat([cont_emb, cat_emb]) == split-weight 2-matmul sum
        out = (jnp.dot(cont_emb, wo_c_ref[...], preferred_element_type=jnp.float32)
               + jnp.dot(cat_emb, wo_e_ref[...], preferred_element_type=jnp.float32)
               + bo_ref[...])
    else:
        out = (jnp.dot(cat_emb, wo_e_ref[...], preferred_element_type=jnp.float32)
               + bo_ref[...])

    out_ref[...] = out.astype(out_ref.dtype)               # (tile, D) store


# ------------------------------ pallas wrapper ------------------------------- #

def embedder_forward(x, params, input_size, *, tile_rows=512):
    """Mirrors Embedder.forward(x); x has shape (..., len(input_size))."""
    input_size = tuple(input_size)
    cont_cols = tuple(i for i, s in enumerate(input_size) if s == 0)
    cat_cols = tuple(i for i, s in enumerate(input_size) if s != 0)
    assert cat_cols, "Embedder requires at least one categorical feature"
    n_cont = len(cont_cols)
    n_feat = len(input_size)
    d_model = params["wo_e"].shape[1]

    lead = x.shape[:-1]
    n_rows = int(math.prod(lead)) if lead else 1
    xf = x.reshape(n_rows, n_feat).astype(jnp.float32)

    # Row offsets of each per-feature table inside the concatenated table.
    offsets, acc = [], 0
    for s in input_size:
        if s != 0:
            offsets.append(acc)
            acc += 1 + s
    table_rows = acc

    # Row tiling: pad N up to a multiple of the tile so every grid step is full
    # (padding rows are zeros and sliced off after the call).
    tile = min(tile_rows, max(8, ((n_rows + 7) // 8) * 8))
    n_pad = ((n_rows + tile - 1) // tile) * tile
    if n_pad != n_rows:
        xf = jnp.pad(xf, ((0, n_pad - n_rows), (0, 0)))
    grid = (n_pad // tile,)

    def pinned(shape):                       # weights/tables: DMA once, stay resident
        return pl.BlockSpec(shape, lambda i: (0, 0))

    if n_cont > 0:
        args = (xf, params["wc"], params["bc"], params["table"],
                params["wo_c"], params["wo_e"], params["bo"])
        in_specs = [pl.BlockSpec((tile, n_feat), lambda i: (i, 0)),
                    pinned(params["wc"].shape), pinned(params["bc"].shape),
                    pinned(params["table"].shape),
                    pinned(params["wo_c"].shape), pinned(params["wo_e"].shape),
                    pinned(params["bo"].shape)]
    else:
        args = (xf, params["table"], params["wo_e"], params["bo"])
        in_specs = [pl.BlockSpec((tile, n_feat), lambda i: (i, 0)),
                    pinned(params["table"].shape),
                    pinned(params["wo_e"].shape), pinned(params["bo"].shape)]

    out = pl.pallas_call(
        partial(_embedder_kernel, cont_cols=cont_cols, cat_cols=cat_cols,
                cat_offsets=tuple(offsets), table_rows=table_rows),
        grid=grid,
        in_specs=in_specs,
        out_specs=pl.BlockSpec((tile, d_model), lambda i: (i, 0)),
        out_shape=jax.ShapeDtypeStruct((n_pad, d_model), jnp.float32),
        compiler_params=pltpu.CompilerParams(
            dimension_semantics=("parallel",)),
    )(*args)
    return out[:n_rows].reshape(*lead, d_model)


# ---------------------------- parameter creation ----------------------------- #

def init_params(key, input_size, d_model):
    input_size = tuple(input_size)
    n_cont = sum(1 for s in input_size if s == 0)
    cat_sizes = [s for s in input_size if s != 0]

    def linear(k, fan_in, fan_out):
        kw, kb = jax.random.split(k)
        bound = 1.0 / math.sqrt(fan_in)
        w = jax.random.uniform(kw, (fan_in, fan_out), jnp.float32, -bound, bound)
        b = jax.random.uniform(kb, (1, fan_out), jnp.float32, -bound, bound)
        return w, b

    params = {}
    tables = []
    for s in cat_sizes:
        key, kt = jax.random.split(key)
        t = jax.random.normal(kt, (1 + s, d_model), jnp.float32)
        t = t.at[0].set(0.0)                       # padding_idx=0 -> zero row
        tables.append(t)
    params["tables"] = tables                      # kept for the pure-JAX reference
    params["table"] = jnp.concatenate(tables, axis=0)

    if n_cont > 0:
        key, kc = jax.random.split(key)
        params["wc"], params["bc"] = linear(kc, n_cont, d_model)
        d_in = 2 * d_model
    else:
        d_in = d_model
    key, ko = jax.random.split(key)
    wo, bo = linear(ko, d_in, d_model)
    if n_cont > 0:
        params["wo_c"] = wo[:d_model]              # continuous half of concat-Linear
        params["wo_e"] = wo[d_model:]              # categorical half
    else:
        params["wo_e"] = wo
    params["bo"] = bo
    return params


# ------------------------------ pure-JAX reference --------------------------- #

def embedder_reference(x, params, input_size):
    input_size = tuple(input_size)
    cont_cols = [i for i, s in enumerate(input_size) if s == 0]
    cat_cols = [i for i, s in enumerate(input_size) if s != 0]
    x_cat = x[..., cat_cols].astype(jnp.int32)
    cat_emb = 0.0
    for j, tab in enumerate(params["tables"]):
        cat_emb = cat_emb + tab[1 + x_cat[..., j]]
    if cont_cols:
        x_cont = x[..., cont_cols].astype(jnp.float32)
        cont_emb = x_cont @ params["wc"] + params["bc"][0]
        inp = jnp.concatenate([cont_emb, cat_emb], axis=-1)
        wo = jnp.concatenate([params["wo_c"], params["wo_e"]], axis=0)
    else:
        inp = cat_emb
        wo = params["wo_e"]
    return inp @ wo + params["bo"][0]


# ------------------------------------ main ------------------------------------ #

if __name__ == "__main__":
    # 3 continuous features (size 0) and 2 categorical features (cardinality 5, 7).
    input_size = (0, 5, 0, 7, 0)
    d_model = 32
    B, S = 2, 8

    key = jax.random.PRNGKey(0)
    kp, kx = jax.random.split(key)
    params = init_params(kp, input_size, d_model)

    # Build x column-by-column: continuous columns ~ N(0,1); categorical columns
    # hold integer values in [-1, s-1] stored as floats (-1 -> padding row).
    col_keys = jax.random.split(kx, len(input_size))
    cols = []
    for i, s in enumerate(input_size):
        if s == 0:
            cols.append(jax.random.normal(col_keys[i], (B, S), jnp.float32))
        else:
            cols.append(jax.random.randint(col_keys[i], (B, S), -1, s)
                        .astype(jnp.float32))
    x = jnp.stack(cols, axis=-1)                       # (B, S, len(input_size))

    out = embedder_forward(x, params, input_size)
    out = jax.block_until_ready(out)

    ref = embedder_reference(x, params, input_size)
    assert out.shape == (B, S, d_model), out.shape
    assert bool(jnp.all(jnp.isfinite(out)))
    assert bool(jnp.allclose(out, ref, atol=2e-3, rtol=2e-3)), \
        float(jnp.max(jnp.abs(out - ref)))
    print("KERNEL_OK")
</pallas_src>

<mosaic_0001>
module attributes {stable_mosaic.version = 11 : i64} {
  func.func @_embedder_kernel(%arg0: i32, %arg1: memref<16x5xf32, #tpu.memory_space<vmem>>, %arg2: memref<3x32xf32, #tpu.memory_space<vmem>>, %arg3: memref<1x32xf32, #tpu.memory_space<vmem>>, %arg4: memref<14x32xf32, #tpu.memory_space<vmem>>, %arg5: memref<32x32xf32, #tpu.memory_space<vmem>>, %arg6: memref<32x32xf32, #tpu.memory_space<vmem>>, %arg7: memref<1x32xf32, #tpu.memory_space<vmem>>, %arg8: memref<16x32xf32, #tpu.memory_space<vmem>>) attributes {dimension_semantics = [#tpu.dimension_semantics<parallel>], iteration_bounds = array<i64: 1>, scalar_prefetch = 0 : i64, scratch_operands = 0 : i64, tpu.core_type = #tpu.core_type<tc>, window_params = [{transform_indices = @transform_0, window_bounds = array<i64: 16, 5>}, {pipeline_mode = #tpu.pipeline_mode<synchronous>, transform_indices = @transform_1, window_bounds = array<i64: 3, 32>}, {pipeline_mode = #tpu.pipeline_mode<synchronous>, transform_indices = @transform_2, window_bounds = array<i64: 1, 32>}, {pipeline_mode = #tpu.pipeline_mode<synchronous>, transform_indices = @transform_3, window_bounds = array<i64: 14, 32>}, {pipeline_mode = #tpu.pipeline_mode<synchronous>, transform_indices = @transform_4, window_bounds = array<i64: 32, 32>}, {pipeline_mode = #tpu.pipeline_mode<synchronous>, transform_indices = @transform_5, window_bounds = array<i64: 32, 32>}, {pipeline_mode = #tpu.pipeline_mode<synchronous>, transform_indices = @transform_6, window_bounds = array<i64: 1, 32>}, {transform_indices = @transform_7, window_bounds = array<i64: 16, 32>}]} {
    %c0 = arith.constant 0 : index
    %c0_0 = arith.constant 0 : index
    %0 = vector.load %arg1[%c0, %c0_0] : memref<16x5xf32, #tpu.memory_space<vmem>>, vector<16x5xf32>
    %1 = tpu.iota {dimensions = array<i32: 1>} : vector<16x14xi32>
    %2 = vector.extract_strided_slice %0 {offsets = [0, 1], sizes = [16, 1], strides = [1, 1]} : vector<16x5xf32> to vector<16x1xf32>
    %3 = arith.fptosi %2 : vector<16x1xf32> to vector<16x1xi32>
    %c1_i32 = arith.constant 1 : i32
    %4 = vector.broadcast %c1_i32 : i32 to vector<16x1xi32>
    %5 = arith.addi %3, %4 : vector<16x1xi32>
    %6 = vector.broadcast %5 : vector<16x1xi32> to vector<16x14xi32>
    %7 = arith.cmpi eq, %1, %6 : vector<16x14xi32>
    %8 = vector.extract_strided_slice %0 {offsets = [0, 3], sizes = [16, 1], strides = [1, 1]} : vector<16x5xf32> to vector<16x1xf32>
    %9 = arith.fptosi %8 : vector<16x1xf32> to vector<16x1xi32>
    %c7_i32 = arith.constant 7 : i32
    %10 = vector.broadcast %c7_i32 : i32 to vector<16x1xi32>
    %11 = arith.addi %9, %10 : vector<16x1xi32>
    %12 = vector.broadcast %11 : vector<16x1xi32> to vector<16x14xi32>
    %13 = arith.cmpi eq, %1, %12 : vector<16x14xi32>
    %14 = arith.ori %7, %13 : vector<16x14xi1>
    %15 = arith.extui %14 : vector<16x14xi1> to vector<16x14xi32>
    %16 = arith.sitofp %15 : vector<16x14xi32> to vector<16x14xf32>
    %c0_1 = arith.constant 0 : index
    %c0_2 = arith.constant 0 : index
    %17 = vector.load %arg4[%c0_1, %c0_2] : memref<14x32xf32, #tpu.memory_space<vmem>>, vector<14x32xf32>
    %cst = arith.constant dense<0.000000e+00> : vector<16x32xf32>
    %18 = tpu.matmul %16, %17, %cst {dimension_numbers = #tpu.dot_dimension_numbers<[1], [0], [0], [1], [0, 0, 1, 1], [], []>} : vector<16x14xf32>, vector<14x32xf32>, vector<16x32xf32> -> vector<16x32xf32>
    %c0_3 = arith.constant 0 : index
    %c0_4 = arith.constant 0 : index
    %19 = vector.load %arg3[%c0_3, %c0_4] : memref<1x32xf32, #tpu.memory_space<vmem>>, vector<1x32xf32>
    %20 = vector.extract_strided_slice %0 {offsets = [0, 0], sizes = [16, 1], strides = [1, 1]} : vector<16x5xf32> to vector<16x1xf32>
    %c0_5 = arith.constant 0 : index
    %c0_6 = arith.constant 0 : index
    %21 = vector.load %arg2[%c0_5, %c0_6] : memref<3x32xf32, #tpu.memory_space<vmem>>, vector<1x32xf32>
    %22 = vector.broadcast %20 : vector<16x1xf32> to vector<16x32xf32>
    %23 = vector.broadcast %21 : vector<1x32xf32> to vector<16x32xf32>
    %24 = arith.mulf %22, %23 : vector<16x32xf32>
    %25 = vector.broadcast %19 : vector<1x32xf32> to vector<16x32xf32>
    %26 = arith.addf %25, %24 : vector<16x32xf32>
    %27 = vector.extract_strided_slice %0 {offsets = [0, 2], sizes = [16, 1], strides = [1, 1]} : vector<16x5xf32> to vector<16x1xf32>
    %c1 = arith.constant 1 : index
    %c0_7 = arith.constant 0 : index
    %28 = vector.load %arg2[%c1, %c0_7] : memref<3x32xf32, #tpu.memory_space<vmem>>, vector<1x32xf32>
    %29 = vector.broadcast %27 : vector<16x1xf32> to vector<16x32xf32>
    %30 = vector.broadcast %28 : vector<1x32xf32> to vector<16x32xf32>
    %31 = arith.mulf %29, %30 : vector<16x32xf32>
    %32 = arith.addf %26, %31 : vector<16x32xf32>
    %33 = vector.extract_strided_slice %0 {offsets = [0, 4], sizes = [16, 1], strides = [1, 1]} : vector<16x5xf32> to vector<16x1xf32>
    %c2 = arith.constant 2 : index
    %c0_8 = arith.constant 0 : index
    %34 = vector.load %arg2[%c2, %c0_8] : memref<3x32xf32, #tpu.memory_space<vmem>>, vector<1x32xf32>
    %35 = vector.broadcast %33 : vector<16x1xf32> to vector<16x32xf32>
    %36 = vector.broadcast %34 : vector<1x32xf32> to vector<16x32xf32>
    %37 = arith.mulf %35, %36 : vector<16x32xf32>
    %38 = arith.addf %32, %37 : vector<16x32xf32>
    %c0_9 = arith.constant 0 : index
    %c0_10 = arith.constant 0 : index
    %39 = vector.load %arg5[%c0_9, %c0_10] : memref<32x32xf32, #tpu.memory_space<vmem>>, vector<32x32xf32>
    %cst_11 = arith.constant dense<0.000000e+00> : vector<16x32xf32>
    %40 = tpu.matmul %38, %39, %cst_11 {dimension_numbers = #tpu.dot_dimension_numbers<[1], [0], [0], [1], [0, 0, 1, 1], [], []>} : vector<16x32xf32>, vector<32x32xf32>, vector<16x32xf32> -> vector<16x32xf32>
    %c0_12 = arith.constant 0 : index
    %c0_13 = arith.constant 0 : index
    %41 = vector.load %arg6[%c0_12, %c0_13] : memref<32x32xf32, #tpu.memory_space<vmem>>, vector<32x32xf32>
    %cst_14 = arith.constant dense<0.000000e+00> : vector<16x32xf32>
    %42 = tpu.matmul %18, %41, %cst_14 {dimension_numbers = #tpu.dot_dimension_numbers<[1], [0], [0], [1], [0, 0, 1, 1], [], []>} : vector<16x32xf32>, vector<32x32xf32>, vector<16x32xf32> -> vector<16x32xf32>
    %43 = arith.addf %40, %42 : vector<16x32xf32>
    %c0_15 = arith.constant 0 : index
    %c0_16 = arith.constant 0 : index
    %44 = vector.load %arg7[%c0_15, %c0_16] : memref<1x32xf32, #tpu.memory_space<vmem>>, vector<1x32xf32>
    %45 = vector.broadcast %44 : vector<1x32xf32> to vector<16x32xf32>
    %46 = arith.addf %43, %45 : vector<16x32xf32>
    %c0_17 = arith.constant 0 : index
    %c0_18 = arith.constant 0 : index
    %47 = vector.load %arg8[%c0_17, %c0_18] : memref<16x32xf32, #tpu.memory_space<vmem>>, vector<16x32xf32>
    tpu.vector_store %arg8[%c0_17, %c0_18], %46 {strides = array<i32>} : memref<16x32xf32, #tpu.memory_space<vmem>>, vector<16x32xf32>,
    return
  }
  func.func @transform_0(%arg0: i32) -> (i32, i32) {
    %c0_i32 = arith.constant 0 : i32
    %c0_i32_0 = arith.constant 0 : i32
    return %arg0, %c0_i32 : i32, i32
  }
  func.func @transform_1(%arg0: i32) -> (i32, i32) {
    %c0_i32 = arith.constant 0 : i32
    %c0_i32_0 = arith.constant 0 : i32
    %c0_i32_1 = arith.constant 0 : i32
    return %c0_i32, %c0_i32_0 : i32, i32
  }
  func.func @transform_2(%arg0: i32) -> (i32, i32) {
    %c0_i32 = arith.constant 0 : i32
    %c0_i32_0 = arith.constant 0 : i32
    %c0_i32_1 = arith.constant 0 : i32
    return %c0_i32, %c0_i32_0 : i32, i32
  }
  func.func @transform_3(%arg0: i32) -> (i32, i32) {
    %c0_i32 = arith.constant 0 : i32
    %c0_i32_0 = arith.constant 0 : i32
    %c0_i32_1 = arith.constant 0 : i32
    return %c0_i32, %c0_i32_0 : i32, i32
  }
  func.func @transform_4(%arg0: i32) -> (i32, i32) {
    %c0_i32 = arith.constant 0 : i32
    %c0_i32_0 = arith.constant 0 : i32
    %c0_i32_1 = arith.constant 0 : i32
    return %c0_i32, %c0_i32_0 : i32, i32
  }
  func.func @transform_5(%arg0: i32) -> (i32, i32) {
    %c0_i32 = arith.constant 0 : i32
    %c0_i32_0 = arith.constant 0 : i32
    %c0_i32_1 = arith.constant 0 : i32
    return %c0_i32, %c0_i32_0 : i32, i32
  }
  func.func @transform_6(%arg0: i32) -> (i32, i32) {
    %c0_i32 = arith.constant 0 : i32
    %c0_i32_0 = arith.constant 0 : i32
    %c0_i32_1 = arith.constant 0 : i32
    return %c0_i32, %c0_i32_0 : i32, i32
  }
  func.func @transform_7(%arg0: i32) -> (i32, i32) {
    %c0_i32 = arith.constant 0 : i32
    %c0_i32_0 = arith.constant 0 : i32
    return %arg0, %c0_i32 : i32, i32
  }
}

</mosaic_0001>

<bundles_post_ra>
// kernel: tpu_custom_call.1
= control target key start
LH: loop header
LB: loop body
LE: loop exit
PB: predicated region body
PF: predicated region fallthrough
CT: control target
= control target key end

     0   :  { %12 = vsyncpa [#allocation3], 0  ;;  %s719_s0 = inlined_call_operand.vmem [shape: f32[16,5], index: 0, kind: input, shape index: {}]   ;;  %s720_s1 = inlined_call_operand.hbm [shape: f32[3,32], index: 1, kind: input, shape index: {}]   ;;  %s721_s2 = inlined_call_operand.vmem [shape: f32[1,32], index: 2, kind: input, shape index: {}]   ;;  %s722_s3 = inlined_call_operand.hbm [shape: f32[14,32], index: 3, kind: input, shape index: {}]   ;;  %s723_s4 = inlined_call_operand.hbm [shape: f32[32,32], index: 4, kind: input, shape index: {}]   ;;  %s724_s5 = inlined_call_operand.vmem [shape: f32[32,32], index: 5, kind: input, shape index: {}]   ;;  %s725_s6 = inlined_call_operand.vmem [shape: f32[1,32], index: 6, kind: input, shape index: {}]   ;;  %s726_s7 = inlined_call_operand.hbm [shape: f32[16,32], index: 7, kind: output, shape index: {}]  }
   0x1   :  { %13 = vsyncpa [#allocation6], 0 }
   0x2   :  { %14 = vsyncpa [#allocation4], 0  ;;  %s616_s24 = smov [#allocation5]  }
   0x3   :  { %s34_s25 = sshll.u32 %s616_s24, 4  ;;  %s35_s25 = int_to_ptr.vmem [resolvable:$true] %s34_s25 }
   0x4   :  { %s538_s26 = scalar_lea.vmem %s35_s25, 256  ;;  %p543_p1 = scmp.lt.s32.totalorder %s35_s25, %s35_s25 }
   0x5   :  { %p539_p0 = scmp.ne.s32.totalorder %s35_s25, %s538_s26  ;;  %p544_p2 = scmp.lt.s32.totalorder %s538_s26, %s538_s26 }
   0x7   :  { %p545_p3 = por %p544_p2, %p543_p1 }
   0x9   :  { %p546_p4 = pnand %p545_p3, %p539_p0 }
   0xb   :  { %549 = shalt.err (!%p546_p4)
}
   0xc   :  { %s617_s27 = smov 128   ;;  %s618_s28 = smov 8  }
   0xd   :  { %40 = dma.hbm_to_vmem [thread:$0]  %s722_s3, 256, %s35_s25, [#allocation6], %s617_s27, %s617_s27, %s618_s28  }
   0xe   :  { %s619_s8 = smov [#allocation2]   ;;  %s620_s10 = smov [#allocation7]  }
   0xf   :  { %s23_s9 = sshll.u32 %s619_s8, 4  ;;  %s46_s11 = sshll.u32 %s620_s10, 4  ;;  %s24_s9 = int_to_ptr.vmem [resolvable:$true] %s23_s9  ;;  %s47_s11 = int_to_ptr.vmem [resolvable:$true] %s46_s11 }
  0x10   :  { %s558_s12 = scalar_lea.vmem %s24_s9, 64  ;;  %p563_p6 = scmp.lt.s32.totalorder %s24_s9, %s24_s9 }
  0x11   :  { %p559_p5 = scmp.ne.s32.totalorder %s24_s9, %s558_s12  ;;  %p564_p7 = scmp.lt.s32.totalorder %s558_s12, %s558_s12 }
  0x13   :  { %p565_p8 = por %p564_p7, %p563_p6 }
  0x15   :  { %p566_p9 = pnand %p565_p8, %p559_p5 }
  0x17   :  { %569 = shalt.err (!%p566_p9)
}
  0x18   :  { %26 = dma.hbm_to_vmem [thread:$0]  %s720_s1, 64, %s24_s9, [#allocation3]  }
  0x19   :  { %s578_s15 = scalar_lea.vmem %s47_s11, 512  ;;  %p583_p11 = scmp.lt.s32.totalorder %s47_s11, %s47_s11 }
  0x1a   :  { %p579_p10 = scmp.ne.s32.totalorder %s47_s11, %s578_s15  ;;  %p584_p12 = scmp.lt.s32.totalorder %s578_s15, %s578_s15 }
  0x1c   :  { %p585_p13 = por %p584_p12, %p583_p11 }
  0x1e   :  { %p586_p0 = pnand %p585_p13, %p579_p10 }
  0x20   :  { %589 = shalt.err (!%p586_p0)
}
  0x21   :  { %52 = dma.hbm_to_vmem [thread:$0]  %s723_s4, 512, %s47_s11, [#allocation6], %s617_s27, %s617_s27, %s618_s28  }
  0x22   :  { %610 = dma.done.wait [#allocation3], 64  }
  0x23   :  { %611 = vsyncadd [#allocation3], 4294967232 }
  0x24   :  { %612 = dma.done.wait [#allocation6], 768  }
  0x25   :  { %613 = vsyncadd [#allocation6], 4294966528  ;;  %v621_v0 = vmov 1   ;;  %v67_v1 = vld [vmem:[%s719_s0 + $0x8] sm:$0xff]  ;;  %v66_v2 = vld [vmem:[%s719_s0] sm:$0xff]  ;;  %vm107_vm0 = vcmask 1045504   ;;  %v68_v20 = vlaneseq }
  0x26   :  { %523 = vset.pattern.permute.xlu1 %v621_v0  ;;  %521 = vset.pattern.permute.xlu0 %v621_v0  ;;  %v507_v3 = vtrunc.f32 %v67_v1  ;;  %v505_v4 = vtrunc.f32 %v66_v2  ;;  %v99_v9 = vld [vmem:[#allocation5 + $0x8] sm:$0x3f]  ;;  %v98_v12 = vld [vmem:[#allocation5] sm:$0xff]  ;;  %v622_v13 = vmov 3   ;;  %v623_v14 = vmov 0   ;;  %v253_v18 = vld [vmem:[%s724_s5 + $0x18] sm:$0xff] }
  0x27   :  { %476 = vmatprep.subr.msk.mxu0 %vm107_vm0, %v99_v9  ;;  %v624_v15 = vmov 2   ;;  %v625_v16 = vmov 4   ;;  %v249_v17 = vld [vmem:[#allocation7 + $0x18] sm:$0xff]  ;;  %483 = vmatprep.subr.mxu1 %v253_v18  ;;  %v69_v23 = vand.u32 127, %v68_v20  ;;  %vm100_vm6 = vcmask 113664   ;;  %v248_v32 = vld [vmem:[#allocation7 + $0x10] sm:$0xff] }
  0x28   :  { %v508_v5 = vcvt.f32.s32 %v507_v3  ;;  %v506_v6 = vcvt.f32.s32 %v505_v4  ;;  %477 = vmatpush3.msk.msra.mxu0 %vm107_vm0, %v99_v9  ;;  %v252_v19 = vld [vmem:[%s724_s5 + $0x10] sm:$0xff]  ;;  %484 = vmatpush3.msra.mxu1 %v253_v18  ;;  %v626_v26 = vmov 0.0   ;;  %v451_v28 = vld [vmem:[#allocation2] ss:$0 sm:$0xff]  ;;  %v453_v36 = vld [vmem:[#allocation2 + $0x1] ss:$0 sm:$0xff] }
  0x29   :  { %478 = vmatprep.subr.mxu0 %v98_v12  ;;  %485 = vmatprep.subr.mxu1 %v252_v19  ;;  %v452_v33 = vld [vmem:[%s721_s2] ss:$0 sm:$0xff]  ;;  %v454_v37 = vld [vmem:[#allocation2 + $0x2] ss:$0 sm:$0xff]  ;;  %v246_v39 = vld [vmem:[#allocation7] sm:$0xff]  ;;  %vm254_vm8 = vcmask 261120  }
  0x2a   :  { %v73_v7 = vadd.s32 1, %v508_v5  ;;  %v72_v8 = vadd.s32 1, %v506_v6  ;;  %v83_v10 = vadd.s32 7, %v508_v5  ;;  %v82_v11 = vadd.s32 7, %v506_v6  ;;  %479 = vmatpush3.msra.mxu0 %v98_v12  ;;  %486 = vmatpush3.msra.mxu1 %v252_v19  ;;  %v247_v35 = vld [vmem:[#allocation7 + $0x8] sm:$0xff]  ;;  %v251_v54 = vld [vmem:[%s724_s5 + $0x8] sm:$0xff] }
  0x2b   :  { %494 = vmatprep.subr.mxu0 %v249_v17  ;;  %487 = vmatprep.subr.mxu1 %v251_v54  ;;  %v250_v55 = vld [vmem:[%s724_s5] sm:$0xff]  ;;  %s627_s8 = smov [#allocation8]  }
  0x2c   :  { %78 = vperm.xlu1 %523, %v73_v7   ;;  %75 = vperm.xlu0 %521, %v72_v8   ;;  %v459_v60 = vld [vmem:[%s725_s6] ss:$0 sm:$0xff]  ;;  %s433_s9 = sshll.u32 %s627_s8, 4  ;;  %s434_s9 = int_to_ptr.vmem [resolvable:$true] %s433_s9 }
  0x2d   :  { %488 = vmatpush3.msra.mxu1 %v251_v54  ;;  %s590_s5 = scalar_lea.vmem %s434_s9, 256  ;;  %p595_p2 = scmp.lt.s32.totalorder %s434_s9, %s434_s9 }
  0x2e   :  { %489 = vmatprep.subr.mxu1 %v250_v55  ;;  %p591_p1 = scmp.ne.s32.totalorder %s434_s9, %s590_s5  ;;  %p596_p3 = scmp.lt.s32.totalorder %s590_s5, %s590_s5 }
  0x2f   :  { %490 = vmatpush3.msra.mxu1 %v250_v55 }
  0x30   :  { %524 = vset.pattern.permute.xlu1 %v622_v13  ;;  %522 = vset.pattern.permute.xlu0 %v622_v13  ;;  %p597_p4 = por %p596_p3, %p595_p2 }
  0x31   :  { %88 = vperm.xlu1 %524, %v83_v10   ;;  %85 = vperm.xlu0 %522, %v82_v11  }
  0x32   :  { %p598_p5 = pnand %p597_p4, %p591_p1 }
  0x35   :  { %525 = vset.pattern.permute.xlu1 %v623_v14  ;;  %526 = vset.pattern.permute.xlu0 %v623_v14 }
  0x36   :  { %190 = vperm.xlu1 %525, %v66_v2   ;;  %195 = vperm.xlu0 %526, %v67_v1  }
  0x3a   :  { %527 = vset.pattern.permute.xlu1 %v624_v15  ;;  %528 = vset.pattern.permute.xlu0 %v625_v16 }
  0x3b   :  { %214 = vperm.xlu1 %527, %v66_v2   ;;  %231 = vperm.xlu0 %528, %v66_v2  }
  0x3f   :  { %218 = vperm.xlu1 %527, %v67_v1  }
  0x43   :  { %529 = vset.pattern.permute.xlu1 %v625_v16 }
  0x44   :  { %235 = vperm.xlu1 %529, %v67_v1  }
  0xa7   :  { %v76_v21 = vpop.permute.xlu0 %75  ;;  %v79_v22 = vpop.permute.xlu1 %78 }
  0xa8   :  { %vm81_vm1 = vcmp.eq.s32.totalorder %v69_v23, %v79_v22  ;;  %vm80_vm4 = vcmp.eq.s32.totalorder %v69_v23, %v76_v21 }
  0xac   :  { %v89_v24 = vpop.permute.xlu1 %88  ;;  %v86_v25 = vpop.permute.xlu0 %85 }
  0xad   :  { %vm91_vm2 = vcmp.eq.s32.totalorder %v69_v23, %v89_v24  ;;  %vm90_vm3 = vcmp.eq.s32.totalorder %v69_v23, %v86_v25 }
  0xae   :  { %vm93_vm5 = vmor %vm81_vm1, %vm91_vm2 }
  0xaf   :  { %vm92_vm7 = vmor %vm80_vm4, %vm90_vm3  ;;  %v447_v27 = vsel %vm93_vm5, 1.0, %v626_v26 }
  0xb0   :  { %v446_v29 = vsel %vm92_vm7, 1.0, %v626_v26 }
  0xb1   :  { %480 = vmatprep.mubr.msk.f32.mxu0 %vm100_vm6, %v446_v29  ;;  %v191_v30 = vpop.permute.xlu1 %190  ;;  %v196_v31 = vpop.permute.xlu0 %195 }
  0xb2   :  { %481 = vmatmul.mubr.msk.f32.vlgmr.msra.gmra.mxu0 %vm100_vm6, %v447_v27  ;;  %v202_v34 = vmul.f32 %v451_v28, %v191_v30  ;;  %v203_v41 = vmul.f32 %v451_v28, %v196_v31 }
  0xb3   :  { %495 = vmatpush3.msra.mxu0 %v249_v17 }
  0xb4   :  { %496 = vmatprep.subr.mxu0 %v248_v32  ;;  %v210_v38 = vadd.f32 %v452_v33, %v202_v34  ;;  %v211_v46 = vadd.f32 %v452_v33, %v203_v41 }
  0xb5   :  { %497 = vmatpush3.msra.mxu0 %v248_v32 }
  0xb6   :  { %v215_v40 = vpop.permute.xlu1 %214  ;;  %v232_v42 = vpop.permute.xlu0 %231  ;;  %498 = vmatprep.subr.mxu0 %v247_v35 }
  0xb7   :  { %v225_v43 = vmul.f32 %v453_v36, %v215_v40  ;;  %v242_v44 = vmul.f32 %v454_v37, %v232_v42  ;;  %499 = vmatpush3.msra.mxu0 %v247_v35 }
  0xb8   :  { %500 = vmatprep.subr.mxu0 %v246_v39 }
  0xb9   :  { %v227_v45 = vadd.f32 %v225_v43, %v210_v38  ;;  %501 = vmatpush3.msra.mxu0 %v246_v39 }
  0xba   :  { %v219_v47 = vpop.permute.xlu1 %218 }
  0xbb   :  { %v226_v48 = vmul.f32 %v453_v36, %v219_v47  ;;  %v244_v49 = vadd.f32 %v242_v44, %v227_v45 }
  0xbd   :  { %502 = vmatprep.mubr.msk.f32.mxu0 %vm254_vm8, %v244_v49  ;;  %v228_v50 = vadd.f32 %v226_v48, %v211_v46 }
  0xbf   :  { %v236_v51 = vpop.permute.xlu1 %235 }
  0xc0   :  { %v243_v52 = vmul.f32 %v454_v37, %v236_v51 }
  0xc2   :  { %v245_v53 = vadd.f32 %v243_v52, %v228_v50 }
  0xc4   :  { %503 = vmatmul.mubr.msk.f32.vlgmr.msra.gmra.mxu0 %vm254_vm8, %v245_v53 }
 0x172   :  { %v482_v56 = vpop.f32.mrf.mxu0 }
 0x174   :  { %v177_v57 = vpop.f32.mrf.mxu0 }
 0x175   :  { %491 = vmatprep.mubr.msk.f32.mxu1 %vm254_vm8, %v177_v57 }
 0x176   :  { %492 = vmatmul.mubr.msk.f32.vlgmr.msra.gmra.mxu1 %vm254_vm8, %v482_v56 }
 0x184   :  { %v504_v58 = vpop.f32.mrf.mxu0 }
 0x186   :  { %v408_v62 = vpop.f32.mrf.mxu0 }
 0x236   :  { %v493_v59 = vpop.f32.mrf.mxu1 }
 0x237   :  { %v414_v61 = vadd.f32 %v504_v58, %v493_v59 }
 0x238   :  { %v327_v63 = vpop.f32.mrf.mxu1 }
 0x239   :  { %v425_v0 = vadd.f32 %v459_v60, %v414_v61  ;;  %v409_v1 = vadd.f32 %v408_v62, %v327_v63 }
 0x23b   :  { %427 = vst.msk [vmem:[#allocation8 + $0x8] sm:$0xff] %vm254_vm8, %v425_v0  ;;  %v424_v2 = vadd.f32 %v459_v60, %v409_v1 }
 0x23d   :  { %426 = vst.msk [vmem:[#allocation8] sm:$0xff] %vm254_vm8, %v424_v2 }
 0x23e   :  { %601 = shalt.err (!%p598_p5)
}
 0x23f   :  { %439 = dma.vmem_to_hbm [thread:$0]  %s434_s9, 256, %s726_s7, [#allocation4], %s617_s27, %s617_s27, %s618_s28  }
 0x240   :  { %614 = dma.done.wait [#allocation4], 256  }
 0x241   :  { %615 = vsyncadd [#allocation4], 4294967040 }
 0x242   :  { %443 = vsyncpa [#allocation3], 1 }
 0x243   :  { %444 = vsyncpa [#allocation6], 1 }
 0x244   :  { %445 = vsyncpa [#allocation4], 1 }

</bundles_post_ra>
